<compile_context>
chip_gen: v5e
topology: v5e:2x2
jax: 0.10.0
libtpu: 0.0.40
codegen_flags: <defaults>
</compile_context>

<pallas_src>
import math

import jax
import jax.numpy as jnp
from jax.experimental import pallas as pl
from jax.experimental.pallas import tpu as pltpu

_SHIFT = math.log(2.0)  # matches torch.log(torch.tensor(2.0)).item()


def _shifted_softplus_kernel(x_ref, o_ref):
    # Upcast to f32 in registers only (HBM traffic stays at native width).
    x = x_ref[...].astype(jnp.float32)
    # Numerically stable softplus: log(1 + exp(x)) = max(x, 0) + log1p(exp(-|x|))
    sp = jnp.maximum(x, 0.0) + jnp.log1p(jnp.exp(-jnp.abs(x)))
    o_ref[...] = (sp - _SHIFT).astype(o_ref.dtype)


def _softplus_shift_jnp(x):
    """Tiny-tail fallback, same stable formula as the kernel."""
    xf = x.astype(jnp.float32)
    sp = jnp.maximum(xf, 0.0) + jnp.log1p(jnp.exp(-jnp.abs(xf)))
    return (sp - _SHIFT).astype(x.dtype)


def _run_kernel_2d(x2d, *, donate=False):
    """Run the kernel on an already lane-dense (rows, lanes) slab."""
    rows, lanes = x2d.shape
    dtype = x2d.dtype
    itemsize = jnp.dtype(dtype).itemsize
    # Packed sublane tile: 8 for f32, 16 for bf16, 32 for int8/fp8.
    sub = max(8, 32 // itemsize)

    # Target ~8 MiB blocks (2048 x 1024 for f32), capped by the data.
    target_rows = max(sub, ((8 << 20) // (lanes * itemsize)) // sub * sub)
    block_rows = min(target_rows, rows)

    total_bytes = rows * lanes * itemsize
    min_steps = 8  # >= ~4 pipelined steps per v7x TensorCore
    if total_bytes >= min_steps * (1 << 20):
        # Large input: ensure enough grid steps for megacore + double-buffer
        # overlap while keeping blocks sublane-tile aligned.
        block_rows = max(
            sub, min(block_rows, pl.cdiv(pl.cdiv(rows, min_steps), sub) * sub)
        )
    if block_rows < rows:
        # Non-full blocks must be sublane-tile aligned (full-dim blocks need not).
        block_rows = max(sub, (block_rows // sub) * sub)

    grid = (pl.cdiv(rows, block_rows),)
    block_bytes = block_rows * lanes * itemsize
    # 2x(in) + 2x(out) double-buffered blocks + slack; capped well under VMEM.
    vmem_limit = min(64 << 20, max(16 << 20, 4 * block_bytes + (4 << 20)))

    extra = {"input_output_aliases": {0: 0}} if donate else {}
    return pl.pallas_call(
        _shifted_softplus_kernel,
        out_shape=jax.ShapeDtypeStruct((rows, lanes), dtype),
        grid_spec=pltpu.PrefetchScalarGridSpec(
            num_scalar_prefetch=0,
            grid=grid,
            in_specs=[pl.BlockSpec((block_rows, lanes), lambda i: (i, 0))],
            out_specs=pl.BlockSpec((block_rows, lanes), lambda i: (i, 0)),
        ),
        compiler_params=pltpu.CompilerParams(
            dimension_semantics=("parallel",),
            vmem_limit_bytes=vmem_limit,
            # Let XLA fuse the wrapper reshape/slice into the operand DMA.
            allow_input_fusion=[True],
        ),
        **extra,
    )(x2d)


def shifted_softplus(x, *, donate=False):
    """Applies softplus(x) - log(2) elementwise. Works for any shape."""
    orig_shape = x.shape
    if not jnp.issubdtype(x.dtype, jnp.floating):
        # Match torch float semantics for non-float inputs.
        x = x.astype(jnp.float32)
    n = x.size
    if n == 0:
        return x.reshape(orig_shape)

    x_flat = jnp.ravel(x)

    # Prefer a lanes value that divides n exactly: no padding, no slicing.
    lanes = None
    for cand in (4096, 2048, 1024, 512, 256, 128):
        if n % cand == 0:
            lanes = cand
            break

    if lanes is not None:
        out_flat = _run_kernel_2d(
            x_flat.reshape(n // lanes, lanes), donate=donate
        ).reshape(-1)
        return out_flat.reshape(orig_shape)

    # Ragged size: run the evenly-tiling bulk through the kernel (input slice
    # fuses into the operand DMA) and handle the tiny tail with plain jnp.
    lanes = 1024
    rows = n // lanes
    split = rows * lanes
    tail_out = _softplus_shift_jnp(x_flat[split:])
    if rows > 0:
        bulk_out = _run_kernel_2d(x_flat[:split].reshape(rows, lanes)).reshape(-1)
        out_flat = jnp.concatenate([bulk_out, tail_out])
    else:
        out_flat = tail_out
    return out_flat.reshape(orig_shape)


if __name__ == "__main__":
    key = jax.random.PRNGKey(0)

    # Main case: evenly-tiling shape (2*4*16*16 = 2048 elements).
    x = jax.random.normal(key, (2, 4, 16, 16), dtype=jnp.float32)
    y = jax.block_until_ready(shifted_softplus(x))
    y_ref = jax.nn.softplus(x) - math.log(2.0)
    assert y.shape == x.shape and y.dtype == x.dtype
    assert jnp.max(jnp.abs(y - y_ref)) < 1e-5

    # Ragged case: 3*500 = 1500 elements (exercises bulk + tail path).
    x2 = jax.random.normal(jax.random.PRNGKey(0), (3, 500), dtype=jnp.float32)
    y2 = jax.block_until_ready(shifted_softplus(x2))
    y2_ref = jax.nn.softplus(x2) - math.log(2.0)
    assert y2.shape == x2.shape and y2.dtype == x2.dtype
    assert jnp.max(jnp.abs(y2 - y2_ref)) < 1e-5

    print("KERNEL_OK")
</pallas_src>

<mosaic_0001>
module attributes {stable_mosaic.version = 11 : i64} {
  func.func @_shifted_softplus_kernel(%arg0: i32, %arg1: memref<1x2048xf32, #tpu.memory_space<vmem>>, %arg2: memref<1x2048xf32, #tpu.memory_space<vmem>>) attributes {dimension_semantics = [#tpu.dimension_semantics<parallel>], iteration_bounds = array<i64: 1>, scalar_prefetch = 0 : i64, scratch_operands = 0 : i64, tpu.core_type = #tpu.core_type<tc>, window_params = [{transform_indices = @transform_0, window_bounds = array<i64: 1, 2048>}, {transform_indices = @transform_1, window_bounds = array<i64: 1, 2048>}]} {
    %c0 = arith.constant 0 : index
    %c0_0 = arith.constant 0 : index
    %0 = vector.load %arg1[%c0, %c0_0] : memref<1x2048xf32, #tpu.memory_space<vmem>>, vector<1x2048xf32>
    %cst = arith.constant 0.000000e+00 : f32
    %1 = vector.broadcast %cst : f32 to vector<1x2048xf32>
    %2 = arith.maximumf %0, %1 : vector<1x2048xf32>
    %3 = math.absf %0 : vector<1x2048xf32>
    %cst_1 = arith.constant 0.000000e+00 : f32
    %4 = vector.broadcast %cst_1 : f32 to vector<1x2048xf32>
    %5 = arith.subf %4, %3 : vector<1x2048xf32>
    %6 = math.exp %5 : vector<1x2048xf32>
    %7 = math.log1p %6 : vector<1x2048xf32>
    %8 = arith.addf %2, %7 : vector<1x2048xf32>
    %cst_2 = arith.constant 0.693147182 : f32
    %9 = vector.broadcast %cst_2 : f32 to vector<1x2048xf32>
    %10 = arith.subf %8, %9 : vector<1x2048xf32>
    %c0_3 = arith.constant 0 : index
    %c0_4 = arith.constant 0 : index
    %11 = vector.load %arg2[%c0_3, %c0_4] : memref<1x2048xf32, #tpu.memory_space<vmem>>, vector<1x2048xf32>
    tpu.vector_store %arg2[%c0_3, %c0_4], %10 {strides = array<i32>} : memref<1x2048xf32, #tpu.memory_space<vmem>>, vector<1x2048xf32>,
    return
  }
  func.func @transform_0(%arg0: i32) -> (i32, i32) {
    %c0_i32 = arith.constant 0 : i32
    %c0_i32_0 = arith.constant 0 : i32
    return %arg0, %c0_i32 : i32, i32
  }
  func.func @transform_1(%arg0: i32) -> (i32, i32) {
    %c0_i32 = arith.constant 0 : i32
    %c0_i32_0 = arith.constant 0 : i32
    return %arg0, %c0_i32 : i32, i32
  }
}

</mosaic_0001>

<bundles_post_ra>
// kernel: tpu_custom_call.1
= control target key start
LH: loop header
LB: loop body
LE: loop exit
PB: predicated region body
PF: predicated region fallthrough
CT: control target
= control target key end

     0   :  { %6 = vsyncpa [#allocation3], 0  ;;  %s158_s0 = inlined_call_operand.hbm [shape: f32[1,2048], index: 0, kind: input, shape index: {}]   ;;  %s159_s1 = inlined_call_operand.hbm [shape: f32[1,2048], index: 1, kind: output, shape index: {}]  }
   0x1   :  { %7 = vsyncpa [#allocation4], 0  ;;  %s13_s8 = sshll.u32 %s158_s0, 4  ;;  %s140_s9 = smov [#allocation2]   ;;  %s14_s8 = int_to_ptr.hbm [resolvable:$true] %s13_s8 }
   0x2   :  { %s15_s10 = sshll.u32 %s140_s9, 4  ;;  %s16_s10 = int_to_ptr.vmem [resolvable:$true] %s15_s10 }
   0x3   :  { %18 = dma.hbm_to_vmem [thread:$0]  %s14_s8, 256, %s16_s10, [#allocation3]  }
   0x4   :  { %136 = dma.done.wait [#allocation3], 256  }
   0x5   :  { %137 = vsyncadd [#allocation3], 4294967040  ;;  %v23_v0 = vld [vmem:[#allocation2] sm:$0xff]  ;;  %v24_v1 = vld [vmem:[#allocation2 + $0x8] sm:$0xff]  ;;  %s141_s0 = smov [#allocation5]   ;;  %s66_s14 = sshll.u32 %s159_s1, 4  ;;  %s67_s14 = int_to_ptr.hbm [resolvable:$true] %s66_s14 }
   0x6   :  { %v27_v2 = vand.u32 2147483647, %v23_v0  ;;  %v28_v3 = vand.u32 2147483647, %v24_v1  ;;  %v25_v20 = vmax.f32 %v23_v0, 0.0  ;;  %v26_v24 = vmax.f32 %v24_v1, 0.0 }
   0x7   :  { %s64_s11 = sshll.u32 %s141_s0, 4  ;;  %s65_s11 = int_to_ptr.vmem [resolvable:$true] %s64_s11 }
   0x8   :  { %v29_v4 = vsub.f32 0.0, %v27_v2  ;;  %v30_v5 = vsub.f32 0.0, %v28_v3 }
   0xa   :  { %v31_v6 = vmul.f32 1.442695, %v29_v4  ;;  %v33_v7 = vmul.f32 1.442695, %v30_v5 }
   0xc   :  { %80 = vpow2.f32 %v31_v6 }
   0xd   :  { %82 = vpow2.f32 %v33_v7 }
  0x12   :  { %v81_v8 = vpop.eup %80 }
  0x13   :  { %v83_v9 = vpop.eup %82  ;;  %v35_v10 = vadd.f32 1.0, %v81_v8  ;;  %v38_v11 = vmul.f32 -0.5, %v81_v8  ;;  %v41_v15 = vand.u32 2147483647, %v81_v8 }
  0x14   :  { %v44_v12 = vadd.f32 1.0, %v83_v9  ;;  %v47_v13 = vmul.f32 -0.5, %v83_v9  ;;  %v50_v17 = vand.u32 2147483647, %v83_v9 }
  0x15   :  { %84 = vlog2.f32 %v35_v10  ;;  %v39_v14 = vadd.f32 1.0, %v38_v11  ;;  %vm42_vm0 = vcmp.lt.f32.partialorder %v41_v15, 0.0004427343 }
  0x16   :  { %86 = vlog2.f32 %v44_v12  ;;  %v48_v16 = vadd.f32 1.0, %v47_v13  ;;  %vm51_vm1 = vcmp.lt.f32.partialorder %v50_v17, 0.0004427343 }
  0x17   :  { %v40_v18 = vmul.f32 %v81_v8, %v39_v14 }
  0x18   :  { %v49_v21 = vmul.f32 %v83_v9, %v48_v16 }
  0x1b   :  { %v85_v19 = vpop.eup %84 }
  0x1c   :  { %v87_v22 = vpop.eup %86  ;;  %v37_v23 = vmul.f32 0.6931472, %v85_v19 }
  0x1d   :  { %v46_v25 = vmul.f32 0.6931472, %v87_v22 }
  0x1e   :  { %v43_v26 = vsel %vm42_vm0, %v40_v18, %v37_v23 }
  0x1f   :  { %v53_v27 = vadd.f32 %v43_v26, %v25_v20  ;;  %v52_v28 = vsel %vm51_vm1, %v49_v21, %v46_v25 }
  0x20   :  { %v54_v29 = vadd.f32 %v52_v28, %v26_v24 }
  0x21   :  { %v76_v30 = vadd.f32 -0.6931472, %v53_v27 }
  0x22   :  { %v77_v31 = vadd.f32 -0.6931472, %v54_v29 }
  0x23   :  { %57 = vst [vmem:[#allocation5] sm:$0xff] %v76_v30 }
  0x24   :  { %58 = vst [vmem:[#allocation5 + $0x8] sm:$0xff] %v77_v31 }
  0x25   :  { %69 = dma.vmem_to_hbm [thread:$0]  %s65_s11, 256, %s67_s14, [#allocation4]  }
  0x26   :  { %138 = dma.done.wait [#allocation4], 256  }
  0x27   :  { %139 = vsyncadd [#allocation4], 4294967040 }
  0x28   :  { %74 = vsyncpa [#allocation3], 1 }
  0x29   :  { %75 = vsyncpa [#allocation4], 1 }

</bundles_post_ra>
